<compile_context>
chip_gen: v6e
topology: v6e:2x2x1
jax: 0.10.0
libtpu: 0.0.40
codegen_flags: <defaults>
</compile_context>

<pallas_src>
import functools

import numpy as np
import jax
import jax.numpy as jnp
from jax import lax
from jax.experimental import pallas as pl
from jax.experimental.pallas import tpu as pltpu

_N_INT = 5   # r_a, r_b, c_b, oh, ow
_N_FLT = 9   # va0, va1, wb0, wb1, vb0, vb1, sym_x, sym_y, inv_count


def _make_kernel(BB, H_pad, W_pad):
    """Kernel body for one grid step of BB batches; scalars come from SMEM."""

    def kernel(imeta_ref, fmeta_ref, grid_ref, out_ref):
        step = pl.program_id(0)

        # Ragged-edge mask iotas: built once per step, shared by all BB batches.
        ri = lax.broadcasted_iota(jnp.int32, (H_pad, W_pad), 0)
        ci = lax.broadcasted_iota(jnp.int32, (H_pad, W_pad), 1)

        total = jnp.float32(0.0)
        for t in range(BB):                      # BB is small & static
            b = step * BB + t                    # absolute batch index
            ib = b * _N_INT
            fb = b * _N_FLT

            r_a = imeta_ref[ib + 0]
            r_b = imeta_ref[ib + 1]
            c_b = imeta_ref[ib + 2]
            oh = imeta_ref[ib + 3]
            ow = imeta_ref[ib + 4]

            va0 = fmeta_ref[fb + 0]
            va1 = fmeta_ref[fb + 1]
            wb0 = fmeta_ref[fb + 2]
            wb1 = fmeta_ref[fb + 3]
            vb0 = fmeta_ref[fb + 4]
            vb1 = fmeta_ref[fb + 5]
            sym_x = fmeta_ref[fb + 6]
            sym_y = fmeta_ref[fb + 7]
            inv_count = fmeta_ref[fb + 8]

            # Channel fold: one (H_pad, W_pad) f32 slab per batch.
            gmix = sym_y * grid_ref[t, 0] + sym_x * grid_ref[t, 1]

            # "A" term: hard row shift by r_a, column lerp over (+0, +1).
            ga0 = pltpu.roll(gmix, (H_pad - r_a) % H_pad, axis=0)  # g[i+r_a, j]
            ga1 = pltpu.roll(ga0, W_pad - 1, axis=1)               # g[i+r_a, j+1]
            t_a = va0 * ga0 + va1 * ga1

            # "B" term: row lerp over (r_b, r_b+1), column lerp over (c_b, c_b+1).
            gb0 = pltpu.roll(gmix, (H_pad - r_b) % H_pad, axis=0)  # g[i+r_b,   j]
            gb1 = pltpu.roll(gb0, H_pad - 1, axis=0)               # g[i+r_b+1, j]
            gb = wb0 * gb0 + wb1 * gb1
            gc0 = pltpu.roll(gb, (W_pad - c_b) % W_pad, axis=1)    # ..[:, j+c_b]
            gc1 = pltpu.roll(gc0, W_pad - 1, axis=1)               # ..[:, j+c_b+1]
            t_b = vb0 * gc0 + vb1 * gc1

            diff = t_a - t_b
            # Valid (OH, OW) window: kills wrapped rows/cols and lane padding.
            valid = (ri < oh) & (ci < ow)
            sq = jnp.where(valid, diff * diff, 0.0)

            # Lane-axis reduce first, then sublane; scale by 1/(OH*OW).
            per_row = jnp.sum(sq, axis=-1, keepdims=True)          # (H_pad, 1)
            total = total + jnp.sum(per_row) * inv_count

        # Lane-dense scalar output: one unmasked (1, 1, 128) row store per step.
        out_ref[...] = total * jnp.ones((1, 1, 128), jnp.float32)

    return kernel


def _vmem_limit_bytes(BB, H_pad, W_pad):
    slab = 4 * H_pad * W_pad
    # double-buffered (BB, 2, H_pad, W_pad) input block + in-kernel temporaries
    needed = slab * (4 * BB + 8 * BB + 2) + (2 << 20)
    try:
        cap = int(pltpu.get_tpu_info().vmem_capacity_bytes)
    except Exception:   # pragma: no cover - conservative fallback (v7x per-TC)
        cap = 64 << 20
    # ~25% headroom for compiler internals / pipelining: never request all of
    # v7x's 64 MiB/TC, while letting v5e/v6e (128 MiB) go well past 64 MiB.
    return int(min(cap - (cap >> 2), max(32 << 20, needed)))


def bilinear_full_sym_loss(grid, gt_sym_axis, gd_sym_axis, C):
    """JAX/Pallas port of BilinearFullSymLoss.forward (fully traceable)."""
    grid = grid.astype(jnp.float32)
    B, nc, H, W = grid.shape
    assert nc == 2

    f32 = jnp.float32
    gt_x = gt_sym_axis[:, 0].astype(f32)
    gt_y = gt_sym_axis[:, 1].astype(f32)
    sym_x = gd_sym_axis[:, 0].astype(f32)
    sym_y = gd_sym_axis[:, 1].astype(f32)

    dx = (-C) * gt_x
    dy = C * gt_y
    dx1f = jnp.floor(dx)
    dy1f = jnp.floor(dy)
    ax = dx - dx1f                       # fractional parts in [0, 1)
    ay = dy - dy1f
    dx1 = dx1f.astype(jnp.int32)
    dy1 = dy1f.astype(jnp.int32)

    # NOTE: like the PyTorch original, legal inputs satisfy dy >= 0 and the
    # shifted windows stay inside the grid; degenerate windows are masked empty
    # (0 contribution) instead of the empty-slice mean the reference would hit.
    pos = dx > 0.0
    zeros_i = jnp.zeros_like(dx1)
    ones_f = jnp.ones_like(ax)
    zeros_f = jnp.zeros_like(ax)

    # "A" term:  dx>0  -> identity sample g[i, j]
    #            dx<=0 -> hard row shift by dy1+1, column lerp over (+0, +1)
    r_a = jnp.where(pos, zeros_i, dy1 + 1)
    va0 = jnp.where(pos, ones_f, 1.0 - ax)
    va1 = jnp.where(pos, zeros_f, ax)

    # "B" term:  dx>0  -> bilinear sample at rows (dy1, dy1+1), cols (dx1, dx1+1)
    #            dx<=0 -> row lerp over (+0, +1) with weights (ay, 1-ay),
    #                     hard column shift by -dx1
    r_b = jnp.where(pos, dy1, zeros_i)
    c_b = jnp.where(pos, dx1, -dx1)
    wb0 = jnp.where(pos, 1.0 - ay, ay)
    wb1 = jnp.where(pos, ay, 1.0 - ay)
    vb0 = jnp.where(pos, 1.0 - ax, ones_f)
    vb1 = jnp.where(pos, ax, zeros_f)

    # Valid output window and the per-batch mean normalizer.
    oh = H - dy1 - 1
    ow = jnp.where(pos, W - dx1 - 1, W + dx1)
    count = jnp.maximum(oh, 1) * jnp.maximum(ow, 1)
    inv_count = 1.0 / count.astype(f32)

    # ---- static tiling decisions -------------------------------------------
    H_pad = ((H + 7) // 8) * 8
    W_pad = ((W + 127) // 128) * 128
    slab_bytes = 2 * H_pad * W_pad * 4
    BB = 8 if slab_bytes <= (128 << 10) else 1     # batch-block small slabs
    BB = max(1, min(BB, B))
    B_pad = ((B + BB - 1) // BB) * BB
    n_steps = B_pad // BB

    # ---- metadata tables: flat 1-D SMEM (no 2-D SMEM lane padding) ----------
    imeta = jnp.stack([r_a, r_b, c_b, oh, ow], axis=1).astype(jnp.int32)
    fmeta = jnp.stack([va0, va1, wb0, wb1, vb0, vb1, sym_x, sym_y, inv_count],
                      axis=1).astype(f32)
    if B_pad != B:
        imeta = jnp.pad(imeta, ((0, B_pad - B), (0, 0)))   # oh=ow=0 -> no work
        fmeta = jnp.pad(fmeta, ((0, B_pad - B), (0, 0)))   # inv_count=0
    imeta = imeta.reshape(-1)                              # (B_pad * 5,)
    fmeta = fmeta.reshape(-1)                              # (B_pad * 9,)

    # ---- pad the grid to an aligned, lane-dense slab ------------------------
    pad_widths = ((0, B_pad - B), (0, 0), (0, H_pad - H), (0, W_pad - W))
    if any(p[1] for p in pad_widths):
        grid = jnp.pad(grid, pad_widths)

    grid_spec = pltpu.PrefetchScalarGridSpec(
        num_scalar_prefetch=1,
        grid=(n_steps,),
        in_specs=[
            pl.BlockSpec(memory_space=pltpu.MemorySpace.SMEM),     # fmeta
            pl.BlockSpec((BB, 2, H_pad, W_pad),
                         lambda s, imeta: (s, 0, 0, 0)),           # grid slab
        ],
        out_specs=pl.BlockSpec((1, 1, 128), lambda s, imeta: (s, 0, 0)),
    )

    out = pl.pallas_call(
        _make_kernel(BB, H_pad, W_pad),
        out_shape=jax.ShapeDtypeStruct((n_steps, 1, 128), jnp.float32),
        grid_spec=grid_spec,
        compiler_params=pltpu.CompilerParams(
            dimension_semantics=("parallel",),
            vmem_limit_bytes=_vmem_limit_bytes(BB, H_pad, W_pad),
        ),
    )(imeta, fmeta, grid)

    # Final cross-batch accumulation stays in f32.
    return jnp.sum(out[:, 0, 0]) / B


def reference_loss(grid, gt, gd, C):
    """NumPy transcription of the PyTorch forward (verification only)."""
    grid = np.asarray(grid, np.float32)
    gt = np.asarray(gt, np.float32)
    gd = np.asarray(gd, np.float32)
    B, _, h, w = grid.shape
    total = 0.0
    for b in range(B):
        dx = np.float32(-C) * gt[b, 0]
        dy = np.float32(C) * gt[b, 1]
        sym_x = gd[b, 0]
        sym_y = gd[b, 1]
        dy1_f = np.floor(dy); dy2_f = dy1_f + 1
        dy1 = int(np.floor(dy)); dy2 = dy1 + 1
        dx1_f = np.floor(dx); dx2_f = dx1_f + 1
        dx1 = int(np.floor(dx)); dx2 = dx1 + 1
        if dx > 0:
            d11x = grid[b, 0, :h - dy1 - 1, :w - dx1 - 1] - grid[b, 0, dy1:-1, dx1:-1]
            d11y = grid[b, 1, :h - dy1 - 1, :w - dx1 - 1] - grid[b, 1, dy1:-1, dx1:-1]
            d21x = grid[b, 0, :h - dy1 - 1, :w - dx2] - grid[b, 0, dy1:-1, dx2:]
            d21y = grid[b, 1, :h - dy1 - 1, :w - dx2] - grid[b, 1, dy1:-1, dx2:]
            d12x = grid[b, 0, :h - dy2, :w - dx1 - 1] - grid[b, 0, dy2:, dx1:-1]
            d12y = grid[b, 1, :h - dy2, :w - dx1 - 1] - grid[b, 1, dy2:, dx1:-1]
            d22x = grid[b, 0, :h - dy2, :w - dx2] - grid[b, 0, dy2:, dx2:]
            d22y = grid[b, 1, :h - dy2, :w - dx2] - grid[b, 1, dy2:, dx2:]
        else:
            d11x = grid[b, 0, dy1 + 1:, :w + dx1] - grid[b, 0, 1:h - dy1, -dx1:]
            d11y = grid[b, 1, dy1 + 1:, :w + dx1] - grid[b, 1, 1:h - dy1, -dx1:]
            d21x = grid[b, 0, dy1 + 1:, 1:w + dx2] - grid[b, 0, 1:h - dy1, -dx2 + 1:]
            d21y = grid[b, 1, dy1 + 1:, 1:w + dx2] - grid[b, 1, 1:h - dy1, -dx2 + 1:]
            d12x = grid[b, 0, dy2:, :w + dx1] - grid[b, 0, :h - dy2, -dx1:]
            d12y = grid[b, 1, dy2:, :w + dx1] - grid[b, 1, :h - dy2, -dx1:]
            d22x = grid[b, 0, dy2:, 1:w + dx2] - grid[b, 0, :h - dy2, -dx2 + 1:]
            d22y = grid[b, 1, dy2:, 1:w + dx2] - grid[b, 1, :h - dy2, -dx2 + 1:]
        dgx = ((dx - dx1_f) * (dy - dy1_f) * d22x + (dx - dx1_f) * (dy2_f - dy) * d21x
               + (dx2_f - dx) * (dy - dy1_f) * d12x + (dx2_f - dx) * (dy2_f - dy) * d11x)
        dgy = ((dx - dx1_f) * (dy - dy1_f) * d22y + (dx - dx1_f) * (dy2_f - dy) * d21y
               + (dx2_f - dx) * (dy - dy1_f) * d12y + (dx2_f - dx) * (dy2_f - dy) * d11y)
        total += ((dgx * sym_y + dgy * sym_x) ** 2).mean()
    return total / B


if __name__ == "__main__":
    key = jax.random.PRNGKey(0)
    B, H, W = 2, 16, 16
    C = 2.0
    k1, k2 = jax.random.split(key, 2)

    grid = jax.random.normal(k1, (B, 2, H, W), dtype=jnp.float32)
    # chosen so batch 0 takes the dx > 0 branch and batch 1 the dx <= 0 branch
    gt_sym_axis = jnp.array([[-0.8, 0.6], [0.7, 1.2]], dtype=jnp.float32)
    gd_sym_axis = jax.random.normal(k2, (B, 2), dtype=jnp.float32)

    loss_fn = jax.jit(functools.partial(bilinear_full_sym_loss, C=C))
    loss = jax.block_until_ready(loss_fn(grid, gt_sym_axis, gd_sym_axis))

    ref = reference_loss(np.asarray(grid), np.asarray(gt_sym_axis),
                         np.asarray(gd_sym_axis), C)
    assert np.allclose(np.float32(loss), np.float32(ref),
                       rtol=2e-3, atol=1e-5), (float(loss), float(ref))
    print("KERNEL_OK")
</pallas_src>

<mosaic_0001>
module attributes {stable_mosaic.version = 11 : i64} {
  func.func @kernel(%arg0: i32, %arg1: memref<10xi32, #tpu.memory_space<smem>>, %arg2: memref<18xf32, #tpu.memory_space<smem>>, %arg3: memref<2x2x16x128xf32, #tpu.memory_space<vmem>>, %arg4: memref<1x1x128xf32, #tpu.memory_space<vmem>>) attributes {dimension_semantics = [#tpu.dimension_semantics<parallel>], iteration_bounds = array<i64: 1>, scalar_prefetch = 1 : i64, scratch_operands = 0 : i64, tpu.core_type = #tpu.core_type<tc>, window_params = [{transform_indices = @transform_0, window_bounds = array<i64: 18>}, {transform_indices = @transform_1, window_bounds = array<i64: 2, 2, 16, 128>}, {transform_indices = @transform_2, window_bounds = array<i64: 1, 1, 128>}]} {
    %0 = tpu.iota {dimensions = array<i32: 0>} : vector<16x128xi32>
    %1 = tpu.iota {dimensions = array<i32: 1>} : vector<16x128xi32>
    %c2_i32 = arith.constant 2 : i32
    %2 = arith.muli %arg0, %c2_i32 : i32
    %c0_i32 = arith.constant 0 : i32
    %3 = arith.addi %2, %c0_i32 : i32
    %c5_i32 = arith.constant 5 : i32
    %4 = arith.muli %3, %c5_i32 : i32
    %c9_i32 = arith.constant 9 : i32
    %5 = arith.muli %3, %c9_i32 : i32
    %c0_i32_0 = arith.constant 0 : i32
    %6 = arith.addi %4, %c0_i32_0 : i32
    %7 = arith.index_cast %6 : i32 to index
    %8 = memref.load %arg1[%7] : memref<10xi32, #tpu.memory_space<smem>>
    %c1_i32 = arith.constant 1 : i32
    %9 = arith.addi %4, %c1_i32 : i32
    %10 = arith.index_cast %9 : i32 to index
    %11 = memref.load %arg1[%10] : memref<10xi32, #tpu.memory_space<smem>>
    %c2_i32_1 = arith.constant 2 : i32
    %12 = arith.addi %4, %c2_i32_1 : i32
    %13 = arith.index_cast %12 : i32 to index
    %14 = memref.load %arg1[%13] : memref<10xi32, #tpu.memory_space<smem>>
    %c3_i32 = arith.constant 3 : i32
    %15 = arith.addi %4, %c3_i32 : i32
    %16 = arith.index_cast %15 : i32 to index
    %17 = memref.load %arg1[%16] : memref<10xi32, #tpu.memory_space<smem>>
    %c4_i32 = arith.constant 4 : i32
    %18 = arith.addi %4, %c4_i32 : i32
    %19 = arith.index_cast %18 : i32 to index
    %20 = memref.load %arg1[%19] : memref<10xi32, #tpu.memory_space<smem>>
    %c0_i32_2 = arith.constant 0 : i32
    %21 = arith.addi %5, %c0_i32_2 : i32
    %22 = arith.index_cast %21 : i32 to index
    %23 = memref.load %arg2[%22] : memref<18xf32, #tpu.memory_space<smem>>
    %c1_i32_3 = arith.constant 1 : i32
    %24 = arith.addi %5, %c1_i32_3 : i32
    %25 = arith.index_cast %24 : i32 to index
    %26 = memref.load %arg2[%25] : memref<18xf32, #tpu.memory_space<smem>>
    %c2_i32_4 = arith.constant 2 : i32
    %27 = arith.addi %5, %c2_i32_4 : i32
    %28 = arith.index_cast %27 : i32 to index
    %29 = memref.load %arg2[%28] : memref<18xf32, #tpu.memory_space<smem>>
    %c3_i32_5 = arith.constant 3 : i32
    %30 = arith.addi %5, %c3_i32_5 : i32
    %31 = arith.index_cast %30 : i32 to index
    %32 = memref.load %arg2[%31] : memref<18xf32, #tpu.memory_space<smem>>
    %c4_i32_6 = arith.constant 4 : i32
    %33 = arith.addi %5, %c4_i32_6 : i32
    %34 = arith.index_cast %33 : i32 to index
    %35 = memref.load %arg2[%34] : memref<18xf32, #tpu.memory_space<smem>>
    %c5_i32_7 = arith.constant 5 : i32
    %36 = arith.addi %5, %c5_i32_7 : i32
    %37 = arith.index_cast %36 : i32 to index
    %38 = memref.load %arg2[%37] : memref<18xf32, #tpu.memory_space<smem>>
    %c6_i32 = arith.constant 6 : i32
    %39 = arith.addi %5, %c6_i32 : i32
    %40 = arith.index_cast %39 : i32 to index
    %41 = memref.load %arg2[%40] : memref<18xf32, #tpu.memory_space<smem>>
    %c7_i32 = arith.constant 7 : i32
    %42 = arith.addi %5, %c7_i32 : i32
    %43 = arith.index_cast %42 : i32 to index
    %44 = memref.load %arg2[%43] : memref<18xf32, #tpu.memory_space<smem>>
    %c8_i32 = arith.constant 8 : i32
    %45 = arith.addi %5, %c8_i32 : i32
    %46 = arith.index_cast %45 : i32 to index
    %47 = memref.load %arg2[%46] : memref<18xf32, #tpu.memory_space<smem>>
    %c0 = arith.constant 0 : index
    %c0_8 = arith.constant 0 : index
    %c0_9 = arith.constant 0 : index
    %c0_10 = arith.constant 0 : index
    %48 = vector.load %arg3[%c0, %c0_8, %c0_9, %c0_10] : memref<2x2x16x128xf32, #tpu.memory_space<vmem>>, vector<1x1x16x128xf32>
    %49 = vector.shape_cast %48 : vector<1x1x16x128xf32> to vector<16x128xf32>
    %50 = vector.broadcast %44 : f32 to vector<16x128xf32>
    %51 = arith.mulf %50, %49 : vector<16x128xf32>
    %c0_11 = arith.constant 0 : index
    %c1 = arith.constant 1 : index
    %c0_12 = arith.constant 0 : index
    %c0_13 = arith.constant 0 : index
    %52 = vector.load %arg3[%c0_11, %c1, %c0_12, %c0_13] : memref<2x2x16x128xf32, #tpu.memory_space<vmem>>, vector<1x1x16x128xf32>
    %53 = vector.shape_cast %52 : vector<1x1x16x128xf32> to vector<16x128xf32>
    %54 = vector.broadcast %41 : f32 to vector<16x128xf32>
    %55 = arith.mulf %54, %53 : vector<16x128xf32>
    %56 = arith.addf %51, %55 : vector<16x128xf32>
    %c16_i32 = arith.constant 16 : i32
    %57 = arith.subi %c16_i32, %8 : i32
    %c16_i32_14 = arith.constant 16 : i32
    %c0_i32_15 = arith.constant 0 : i32
    %58 = arith.cmpi eq, %c16_i32_14, %c0_i32_15 : i32
    %c1_i32_16 = arith.constant 1 : i32
    %59 = arith.select %58, %c1_i32_16, %c16_i32_14 : i32
    %60 = arith.remsi %57, %59 : i32
    %c0_i32_17 = arith.constant 0 : i32
    %61 = arith.cmpi ne, %60, %c0_i32_17 : i32
    %c0_i32_18 = arith.constant 0 : i32
    %62 = arith.cmpi slt, %60, %c0_i32_18 : i32
    %c0_i32_19 = arith.constant 0 : i32
    %63 = arith.cmpi slt, %59, %c0_i32_19 : i32
    %64 = arith.xori %62, %63 : i1
    %65 = arith.andi %64, %61 : i1
    %66 = arith.addi %60, %59 : i32
    %67 = arith.select %65, %66, %60 : i32
    %68 = tpu.dynamic_rotate %56 by %67 dim 0 : vector<16x128xf32>, i32 -> vector<16x128xf32>
    %c127_i32 = arith.constant 127 : i32
    %69 = tpu.dynamic_rotate %68 by %c127_i32 dim 1 : vector<16x128xf32>, i32 -> vector<16x128xf32>
    %70 = vector.broadcast %23 : f32 to vector<16x128xf32>
    %71 = arith.mulf %70, %68 : vector<16x128xf32>
    %72 = vector.broadcast %26 : f32 to vector<16x128xf32>
    %73 = arith.mulf %72, %69 : vector<16x128xf32>
    %74 = arith.addf %71, %73 : vector<16x128xf32>
    %c16_i32_20 = arith.constant 16 : i32
    %75 = arith.subi %c16_i32_20, %11 : i32
    %c16_i32_21 = arith.constant 16 : i32
    %c0_i32_22 = arith.constant 0 : i32
    %76 = arith.cmpi eq, %c16_i32_21, %c0_i32_22 : i32
    %c1_i32_23 = arith.constant 1 : i32
    %77 = arith.select %76, %c1_i32_23, %c16_i32_21 : i32
    %78 = arith.remsi %75, %77 : i32
    %c0_i32_24 = arith.constant 0 : i32
    %79 = arith.cmpi ne, %78, %c0_i32_24 : i32
    %c0_i32_25 = arith.constant 0 : i32
    %80 = arith.cmpi slt, %78, %c0_i32_25 : i32
    %c0_i32_26 = arith.constant 0 : i32
    %81 = arith.cmpi slt, %77, %c0_i32_26 : i32
    %82 = arith.xori %80, %81 : i1
    %83 = arith.andi %82, %79 : i1
    %84 = arith.addi %78, %77 : i32
    %85 = arith.select %83, %84, %78 : i32
    %86 = tpu.dynamic_rotate %56 by %85 dim 0 : vector<16x128xf32>, i32 -> vector<16x128xf32>
    %c15_i32 = arith.constant 15 : i32
    %87 = tpu.dynamic_rotate %86 by %c15_i32 dim 0 : vector<16x128xf32>, i32 -> vector<16x128xf32>
    %88 = vector.broadcast %29 : f32 to vector<16x128xf32>
    %89 = arith.mulf %88, %86 : vector<16x128xf32>
    %90 = vector.broadcast %32 : f32 to vector<16x128xf32>
    %91 = arith.mulf %90, %87 : vector<16x128xf32>
    %92 = arith.addf %89, %91 : vector<16x128xf32>
    %c128_i32 = arith.constant 128 : i32
    %93 = arith.subi %c128_i32, %14 : i32
    %c128_i32_27 = arith.constant 128 : i32
    %c0_i32_28 = arith.constant 0 : i32
    %94 = arith.cmpi eq, %c128_i32_27, %c0_i32_28 : i32
    %c1_i32_29 = arith.constant 1 : i32
    %95 = arith.select %94, %c1_i32_29, %c128_i32_27 : i32
    %96 = arith.remsi %93, %95 : i32
    %c0_i32_30 = arith.constant 0 : i32
    %97 = arith.cmpi ne, %96, %c0_i32_30 : i32
    %c0_i32_31 = arith.constant 0 : i32
    %98 = arith.cmpi slt, %96, %c0_i32_31 : i32
    %c0_i32_32 = arith.constant 0 : i32
    %99 = arith.cmpi slt, %95, %c0_i32_32 : i32
    %100 = arith.xori %98, %99 : i1
    %101 = arith.andi %100, %97 : i1
    %102 = arith.addi %96, %95 : i32
    %103 = arith.select %101, %102, %96 : i32
    %104 = tpu.dynamic_rotate %92 by %103 dim 1 : vector<16x128xf32>, i32 -> vector<16x128xf32>
    %c127_i32_33 = arith.constant 127 : i32
    %105 = tpu.dynamic_rotate %104 by %c127_i32_33 dim 1 : vector<16x128xf32>, i32 -> vector<16x128xf32>
    %106 = vector.broadcast %35 : f32 to vector<16x128xf32>
    %107 = arith.mulf %106, %104 : vector<16x128xf32>
    %108 = vector.broadcast %38 : f32 to vector<16x128xf32>
    %109 = arith.mulf %108, %105 : vector<16x128xf32>
    %110 = arith.addf %107, %109 : vector<16x128xf32>
    %111 = arith.subf %74, %110 : vector<16x128xf32>
    %112 = vector.broadcast %17 : i32 to vector<16x128xi32>
    %113 = arith.cmpi slt, %0, %112 : vector<16x128xi32>
    %114 = vector.broadcast %20 : i32 to vector<16x128xi32>
    %115 = arith.cmpi slt, %1, %114 : vector<16x128xi32>
    %116 = arith.andi %113, %115 : vector<16x128xi1>
    %117 = arith.mulf %111, %111 : vector<16x128xf32>
    %cst = arith.constant 0.000000e+00 : f32
    %118 = vector.broadcast %cst : f32 to vector<16x128xf32>
    %119 = arith.select %116, %117, %118 : vector<16x128xi1>, vector<16x128xf32>
    %cst_34 = arith.constant dense<0.000000e+00> : vector<16xf32>
    %120 = vector.multi_reduction <add>, %119, %cst_34 [1] : vector<16x128xf32> to vector<16xf32>
    %121 = vector.shape_cast %120 : vector<16xf32> to vector<16x1xf32>
    %122 = vector.shape_cast %121 : vector<16x1xf32> to vector<1x16x1xf32>
    %cst_35 = arith.constant dense<0.000000e+00> : vector<1xf32>
    %123 = vector.multi_reduction <add>, %122, %cst_35 [1, 2] : vector<1x16x1xf32> to vector<1xf32>
    %124 = vector.shape_cast %123 : vector<1xf32> to vector<1x1x1xf32>
    %125 = vector.extract %124[0, 0, 0] : f32 from vector<1x1x1xf32>
    %126 = arith.mulf %125, %47 : f32
    %cst_36 = arith.constant 0.000000e+00 : f32
    %127 = arith.addf %cst_36, %126 : f32
    %c2_i32_37 = arith.constant 2 : i32
    %128 = arith.muli %arg0, %c2_i32_37 : i32
    %c1_i32_38 = arith.constant 1 : i32
    %129 = arith.addi %128, %c1_i32_38 : i32
    %c5_i32_39 = arith.constant 5 : i32
    %130 = arith.muli %129, %c5_i32_39 : i32
    %c9_i32_40 = arith.constant 9 : i32
    %131 = arith.muli %129, %c9_i32_40 : i32
    %c0_i32_41 = arith.constant 0 : i32
    %132 = arith.addi %130, %c0_i32_41 : i32
    %133 = arith.index_cast %132 : i32 to index
    %134 = memref.load %arg1[%133] : memref<10xi32, #tpu.memory_space<smem>>
    %c1_i32_42 = arith.constant 1 : i32
    %135 = arith.addi %130, %c1_i32_42 : i32
    %136 = arith.index_cast %135 : i32 to index
    %137 = memref.load %arg1[%136] : memref<10xi32, #tpu.memory_space<smem>>
    %c2_i32_43 = arith.constant 2 : i32
    %138 = arith.addi %130, %c2_i32_43 : i32
    %139 = arith.index_cast %138 : i32 to index
    %140 = memref.load %arg1[%139] : memref<10xi32, #tpu.memory_space<smem>>
    %c3_i32_44 = arith.constant 3 : i32
    %141 = arith.addi %130, %c3_i32_44 : i32
    %142 = arith.index_cast %141 : i32 to index
    %143 = memref.load %arg1[%142] : memref<10xi32, #tpu.memory_space<smem>>
    %c4_i32_45 = arith.constant 4 : i32
    %144 = arith.addi %130, %c4_i32_45 : i32
    %145 = arith.index_cast %144 : i32 to index
    %146 = memref.load %arg1[%145] : memref<10xi32, #tpu.memory_space<smem>>
    %c0_i32_46 = arith.constant 0 : i32
    %147 = arith.addi %131, %c0_i32_46 : i32
    %148 = arith.index_cast %147 : i32 to index
    %149 = memref.load %arg2[%148] : memref<18xf32, #tpu.memory_space<smem>>
    %c1_i32_47 = arith.constant 1 : i32
    %150 = arith.addi %131, %c1_i32_47 : i32
    %151 = arith.index_cast %150 : i32 to index
    %152 = memref.load %arg2[%151] : memref<18xf32, #tpu.memory_space<smem>>
    %c2_i32_48 = arith.constant 2 : i32
    %153 = arith.addi %131, %c2_i32_48 : i32
    %154 = arith.index_cast %153 : i32 to index
    %155 = memref.load %arg2[%154] : memref<18xf32, #tpu.memory_space<smem>>
    %c3_i32_49 = arith.constant 3 : i32
    %156 = arith.addi %131, %c3_i32_49 : i32
    %157 = arith.index_cast %156 : i32 to index
    %158 = memref.load %arg2[%157] : memref<18xf32, #tpu.memory_space<smem>>
    %c4_i32_50 = arith.constant 4 : i32
    %159 = arith.addi %131, %c4_i32_50 : i32
    %160 = arith.index_cast %159 : i32 to index
    %161 = memref.load %arg2[%160] : memref<18xf32, #tpu.memory_space<smem>>
    %c5_i32_51 = arith.constant 5 : i32
    %162 = arith.addi %131, %c5_i32_51 : i32
    %163 = arith.index_cast %162 : i32 to index
    %164 = memref.load %arg2[%163] : memref<18xf32, #tpu.memory_space<smem>>
    %c6_i32_52 = arith.constant 6 : i32
    %165 = arith.addi %131, %c6_i32_52 : i32
    %166 = arith.index_cast %165 : i32 to index
    %167 = memref.load %arg2[%166] : memref<18xf32, #tpu.memory_space<smem>>
    %c7_i32_53 = arith.constant 7 : i32
    %168 = arith.addi %131, %c7_i32_53 : i32
    %169 = arith.index_cast %168 : i32 to index
    %170 = memref.load %arg2[%169] : memref<18xf32, #tpu.memory_space<smem>>
    %c8_i32_54 = arith.constant 8 : i32
    %171 = arith.addi %131, %c8_i32_54 : i32
    %172 = arith.index_cast %171 : i32 to index
    %173 = memref.load %arg2[%172] : memref<18xf32, #tpu.memory_space<smem>>
    %c1_55 = arith.constant 1 : index
    %c0_56 = arith.constant 0 : index
    %c0_57 = arith.constant 0 : index
    %c0_58 = arith.constant 0 : index
    %174 = vector.load %arg3[%c1_55, %c0_56, %c0_57, %c0_58] : memref<2x2x16x128xf32, #tpu.memory_space<vmem>>, vector<1x1x16x128xf32>
    %175 = vector.shape_cast %174 : vector<1x1x16x128xf32> to vector<16x128xf32>
    %176 = vector.broadcast %170 : f32 to vector<16x128xf32>
    %177 = arith.mulf %176, %175 : vector<16x128xf32>
    %c1_59 = arith.constant 1 : index
    %c1_60 = arith.constant 1 : index
    %c0_61 = arith.constant 0 : index
    %c0_62 = arith.constant 0 : index
    %178 = vector.load %arg3[%c1_59, %c1_60, %c0_61, %c0_62] : memref<2x2x16x128xf32, #tpu.memory_space<vmem>>, vector<1x1x16x128xf32>
    %179 = vector.shape_cast %178 : vector<1x1x16x128xf32> to vector<16x128xf32>
    %180 = vector.broadcast %167 : f32 to vector<16x128xf32>
    %181 = arith.mulf %180, %179 : vector<16x128xf32>
    %182 = arith.addf %177, %181 : vector<16x128xf32>
    %c16_i32_63 = arith.constant 16 : i32
    %183 = arith.subi %c16_i32_63, %134 : i32
    %c16_i32_64 = arith.constant 16 : i32
    %c0_i32_65 = arith.constant 0 : i32
    %184 = arith.cmpi eq, %c16_i32_64, %c0_i32_65 : i32
    %c1_i32_66 = arith.constant 1 : i32
    %185 = arith.select %184, %c1_i32_66, %c16_i32_64 : i32
    %186 = arith.remsi %183, %185 : i32
    %c0_i32_67 = arith.constant 0 : i32
    %187 = arith.cmpi ne, %186, %c0_i32_67 : i32
    %c0_i32_68 = arith.constant 0 : i32
    %188 = arith.cmpi slt, %186, %c0_i32_68 : i32
    %c0_i32_69 = arith.constant 0 : i32
    %189 = arith.cmpi slt, %185, %c0_i32_69 : i32
    %190 = arith.xori %188, %189 : i1
    %191 = arith.andi %190, %187 : i1
    %192 = arith.addi %186, %185 : i32
    %193 = arith.select %191, %192, %186 : i32
    %194 = tpu.dynamic_rotate %182 by %193 dim 0 : vector<16x128xf32>, i32 -> vector<16x128xf32>
    %c127_i32_70 = arith.constant 127 : i32
    %195 = tpu.dynamic_rotate %194 by %c127_i32_70 dim 1 : vector<16x128xf32>, i32 -> vector<16x128xf32>
    %196 = vector.broadcast %149 : f32 to vector<16x128xf32>
    %197 = arith.mulf %196, %194 : vector<16x128xf32>
    %198 = vector.broadcast %152 : f32 to vector<16x128xf32>
    %199 = arith.mulf %198, %195 : vector<16x128xf32>
    %200 = arith.addf %197, %199 : vector<16x128xf32>
    %c16_i32_71 = arith.constant 16 : i32
    %201 = arith.subi %c16_i32_71, %137 : i32
    %c16_i32_72 = arith.constant 16 : i32
    %c0_i32_73 = arith.constant 0 : i32
    %202 = arith.cmpi eq, %c16_i32_72, %c0_i32_73 : i32
    %c1_i32_74 = arith.constant 1 : i32
    %203 = arith.select %202, %c1_i32_74, %c16_i32_72 : i32
    %204 = arith.remsi %201, %203 : i32
    %c0_i32_75 = arith.constant 0 : i32
    %205 = arith.cmpi ne, %204, %c0_i32_75 : i32
    %c0_i32_76 = arith.constant 0 : i32
    %206 = arith.cmpi slt, %204, %c0_i32_76 : i32
    %c0_i32_77 = arith.constant 0 : i32
    %207 = arith.cmpi slt, %203, %c0_i32_77 : i32
    %208 = arith.xori %206, %207 : i1
    %209 = arith.andi %208, %205 : i1
    %210 = arith.addi %204, %203 : i32
    %211 = arith.select %209, %210, %204 : i32
    %212 = tpu.dynamic_rotate %182 by %211 dim 0 : vector<16x128xf32>, i32 -> vector<16x128xf32>
    %c15_i32_78 = arith.constant 15 : i32
    %213 = tpu.dynamic_rotate %212 by %c15_i32_78 dim 0 : vector<16x128xf32>, i32 -> vector<16x128xf32>
    %214 = vector.broadcast %155 : f32 to vector<16x128xf32>
    %215 = arith.mulf %214, %212 : vector<16x128xf32>
    %216 = vector.broadcast %158 : f32 to vector<16x128xf32>
    %217 = arith.mulf %216, %213 : vector<16x128xf32>
    %218 = arith.addf %215, %217 : vector<16x128xf32>
    %c128_i32_79 = arith.constant 128 : i32
    %219 = arith.subi %c128_i32_79, %140 : i32
    %c128_i32_80 = arith.constant 128 : i32
    %c0_i32_81 = arith.constant 0 : i32
    %220 = arith.cmpi eq, %c128_i32_80, %c0_i32_81 : i32
    %c1_i32_82 = arith.constant 1 : i32
    %221 = arith.select %220, %c1_i32_82, %c128_i32_80 : i32
    %222 = arith.remsi %219, %221 : i32
    %c0_i32_83 = arith.constant 0 : i32
    %223 = arith.cmpi ne, %222, %c0_i32_83 : i32
    %c0_i32_84 = arith.constant 0 : i32
    %224 = arith.cmpi slt, %222, %c0_i32_84 : i32
    %c0_i32_85 = arith.constant 0 : i32
    %225 = arith.cmpi slt, %221, %c0_i32_85 : i32
    %226 = arith.xori %224, %225 : i1
    %227 = arith.andi %226, %223 : i1
    %228 = arith.addi %222, %221 : i32
    %229 = arith.select %227, %228, %222 : i32
    %230 = tpu.dynamic_rotate %218 by %229 dim 1 : vector<16x128xf32>, i32 -> vector<16x128xf32>
    %c127_i32_86 = arith.constant 127 : i32
    %231 = tpu.dynamic_rotate %230 by %c127_i32_86 dim 1 : vector<16x128xf32>, i32 -> vector<16x128xf32>
    %232 = vector.broadcast %161 : f32 to vector<16x128xf32>
    %233 = arith.mulf %232, %230 : vector<16x128xf32>
    %234 = vector.broadcast %164 : f32 to vector<16x128xf32>
    %235 = arith.mulf %234, %231 : vector<16x128xf32>
    %236 = arith.addf %233, %235 : vector<16x128xf32>
    %237 = arith.subf %200, %236 : vector<16x128xf32>
    %238 = vector.broadcast %143 : i32 to vector<16x128xi32>
    %239 = arith.cmpi slt, %0, %238 : vector<16x128xi32>
    %240 = vector.broadcast %146 : i32 to vector<16x128xi32>
    %241 = arith.cmpi slt, %1, %240 : vector<16x128xi32>
    %242 = arith.andi %239, %241 : vector<16x128xi1>
    %243 = arith.mulf %237, %237 : vector<16x128xf32>
    %cst_87 = arith.constant 0.000000e+00 : f32
    %244 = vector.broadcast %cst_87 : f32 to vector<16x128xf32>
    %245 = arith.select %242, %243, %244 : vector<16x128xi1>, vector<16x128xf32>
    %cst_88 = arith.constant dense<0.000000e+00> : vector<16xf32>
    %246 = vector.multi_reduction <add>, %245, %cst_88 [1] : vector<16x128xf32> to vector<16xf32>
    %247 = vector.shape_cast %246 : vector<16xf32> to vector<16x1xf32>
    %248 = vector.shape_cast %247 : vector<16x1xf32> to vector<1x16x1xf32>
    %cst_89 = arith.constant dense<0.000000e+00> : vector<1xf32>
    %249 = vector.multi_reduction <add>, %248, %cst_89 [1, 2] : vector<1x16x1xf32> to vector<1xf32>
    %250 = vector.shape_cast %249 : vector<1xf32> to vector<1x1x1xf32>
    %251 = vector.extract %250[0, 0, 0] : f32 from vector<1x1x1xf32>
    %252 = arith.mulf %251, %173 : f32
    %253 = arith.addf %127, %252 : f32
    %cst_90 = arith.constant 1.000000e+00 : f32
    %254 = vector.broadcast %cst_90 : f32 to vector<1x1x128xf32>
    %255 = vector.broadcast %253 : f32 to vector<1x1x128xf32>
    %256 = arith.mulf %255, %254 : vector<1x1x128xf32>
    %c0_91 = arith.constant 0 : index
    %c0_92 = arith.constant 0 : index
    %c0_93 = arith.constant 0 : index
    %257 = vector.load %arg4[%c0_91, %c0_92, %c0_93] : memref<1x1x128xf32, #tpu.memory_space<vmem>>, vector<1x1x128xf32>
    tpu.vector_store %arg4[%c0_91, %c0_92, %c0_93], %256 {strides = array<i32>} : memref<1x1x128xf32, #tpu.memory_space<vmem>>, vector<1x1x128xf32>,
    return
  }
  func.func @transform_0(%arg0: i32, %arg1: memref<10xi32, #tpu.memory_space<smem>>) -> i32 {
    %c0_i32 = arith.constant 0 : i32
    %c0_i32_0 = arith.constant 0 : i32
    return %c0_i32 : i32
  }
  func.func @transform_1(%arg0: i32, %arg1: memref<10xi32, #tpu.memory_space<smem>>) -> (i32, i32, i32, i32) {
    %c0_i32 = arith.constant 0 : i32
    %c0_i32_0 = arith.constant 0 : i32
    %c0_i32_1 = arith.constant 0 : i32
    %c0_i32_2 = arith.constant 0 : i32
    return %arg0, %c0_i32, %c0_i32_0, %c0_i32_1 : i32, i32, i32, i32
  }
  func.func @transform_2(%arg0: i32, %arg1: memref<10xi32, #tpu.memory_space<smem>>) -> (i32, i32, i32) {
    %c0_i32 = arith.constant 0 : i32
    %c0_i32_0 = arith.constant 0 : i32
    %c0_i32_1 = arith.constant 0 : i32
    return %arg0, %c0_i32, %c0_i32_0 : i32, i32, i32
  }
}

</mosaic_0001>

<bundles_post_ra>
// kernel: bilinear_full_sym_loss.1
= control target key start
LH: loop header
LB: loop body
LE: loop exit
PB: predicated region body
PF: predicated region fallthrough
CT: control target
= control target key end

     0   :  { %s723_s0 = inlined_call_operand.vmem [shape: s32[10], index: 0, kind: input, shape index: {}]   ;;  %s724_s1 = inlined_call_operand.vmem [shape: f32[18], index: 1, kind: input, shape index: {}]   ;;  %s725_s2 = inlined_call_operand.vmem [shape: f32[2,2,16,128], index: 2, kind: input, shape index: {}]   ;;  %s726_s3 = inlined_call_operand.vmem [shape: f32[1,1,128], index: 3, kind: output, shape index: {}]  }
   0x1   :  { %s8_s14 = sshll.u32 %s723_s0, 4  ;;  %s9_s14 = int_to_ptr.vmem [resolvable:$true] %s8_s14 }
   0x2   :  { %s479_s15 = scalar_lea.vmem %s9_s14, 16  ;;  %p484_p1 = scmp.lt.s32.totalorder %s9_s14, %s9_s14 }
   0x3   :  { %p480_p0 = scmp.ne.s32.totalorder %s9_s14, %s479_s15  ;;  %p485_p2 = scmp.lt.s32.totalorder %s479_s15, %s479_s15 }
   0x5   :  { %p486_p3 = por %p485_p2, %p484_p1 }
   0x7   :  { %p487_p4 = pnand %p486_p3, %p480_p0 }
   0x9   :  { %490 = shalt.err (!%p487_p4)  }
   0xa   :  { %s507_s16 = smov [#allocation3]  }
   0xb   :  { %11 = dma.vmem_to_smem %s9_s14, 16, %s507_s16, [#allocation2] }
   0xc   :  { %503 = dma.done.wait [#allocation2], 16 }
   0xd   :  { %504 = vsyncadd [#allocation2], 4294967280 }
   0xe   :  { %13 = sfence }
   0xf   :  { %14 = vsyncpa [#allocation5], 0  ;;  %s21_s19 = sshll.u32 %s724_s1, 4  ;;  %s22_s19 = int_to_ptr.vmem [resolvable:$true] %s21_s19 }
  0x10   :  { %s491_s0 = scalar_lea.vmem %s22_s19, 16  ;;  %p496_p6 = scmp.lt.s32.totalorder %s22_s19, %s22_s19 }
  0x11   :  { %p492_p5 = scmp.ne.s32.totalorder %s22_s19, %s491_s0  ;;  %p497_p7 = scmp.lt.s32.totalorder %s491_s0, %s491_s0 }
  0x13   :  { %p498_p8 = por %p497_p7, %p496_p6 }
  0x15   :  { %p499_p9 = pnand %p498_p8, %p492_p5 }
  0x17   :  { %502 = shalt.err (!%p499_p9)
}
  0x18   :  { %s508_s20 = smov [#allocation4]  }
  0x19   :  { %24 = dma.vmem_to_smem %s22_s19, 16, %s508_s20, [#allocation5]  }
  0x1a   :  { %505 = dma.done.wait [#allocation5], 16  }
  0x1b   :  { %506 = vsyncadd [#allocation5], 4294967280 }
  0x1c   :  { %30 = sfence }
  0x1d   :  { %s422_s21 = sld [smem:[#allocation3 + $0x1]]  ;;  %v64_v0 = vld [vmem:[%s725_s2] sm:$0xff]  ;;  %v65_v1 = vld [vmem:[%s725_s2 + $0x8] sm:$0xff]  ;;  %v434_v2 = vld [vmem:[%s725_s2 + $0x10] sm:$0xff]  ;;  %v31_v6 = vlaneseq }
  0x1e   :  { %s423_s22 = sld [smem:[#allocation3 + $0x2]]  ;;  %v435_v3 = vld [vmem:[%s725_s2 + $0x18] sm:$0xff]  ;;  %v461_v28 = vld [vmem:[%s725_s2 + $0x30] sm:$0xff]  ;;  %v459_v32 = vld [vmem:[%s725_s2 + $0x20] sm:$0xff] }
  0x1f   :  { %s536_s23 = sld [smem:[#allocation4 + $0x2]]  ;;  %v563_v11 = vshrl.u32 %v31_v6, 7  ;;  %v460_v33 = vld [vmem:[%s725_s2 + $0x28] sm:$0xff]  ;;  %v462_v35 = vld [vmem:[%s725_s2 + $0x38] sm:$0xff] }
  0x20   :  { %s431_s24 = sld [smem:[#allocation4 + $0x6]] }
  0x21   :  { %s432_s25 = sld [smem:[#allocation4 + $0x7]]  ;;  %vm151_vm2 = vcmp.lt.s32.totalorder %v563_v11, 7 }
  0x22   :  { %s538_s1 = sld [smem:[#allocation4 + $0x3]] }
  0x23   :  { %s119_s26 = ssub.s32 16, %s422_s21  ;;  %s545_s6 = sld [smem:[#allocation3 + $0x6]] }
  0x24   :  { %p120_p10 = scmp.lt.s32.totalorder %s119_s26, 0  ;;  %s121_s27 = ssub.s32 0, %s119_s26 }
  0x25   :  { %s439_s28 = smin.u32 %s121_s27, %s119_s26  ;;  %s540_s29 = ssub.s32 128, %s423_s22  ;;  %v154_v21 = vstv %s536_s23 }
  0x26   :  { %s123_s5 = sand.u32 15, %s439_s28   ;;  %v72_v4 = vstv %s431_s24  ;;  %s164_s14 = ssub.s32 0, %s540_s29 }
  0x27   :  { %s124_s13 = ssub.s32 0, %s123_s5  ;;  %v66_v5 = vstv %s432_s25  ;;  %p163_p11 = scmp.lt.s32.totalorder %s540_s29, 0  ;;  %v73_v9 = vmul.f32 %v434_v2, %v72_v4  ;;  %v74_v10 = vmul.f32 %v435_v3, %v72_v4 }
  0x28   :  { %s734_s13 = smov (!%p120_p10, %s124_s13), %s123_s5  ;;  %s442_s15 = smin.u32 %s164_s14, %s540_s29  ;;  %v67_v7 = vmul.f32 %v66_v5, %v64_v0  ;;  %v68_v8 = vmul.f32 %v66_v5, %v65_v1  ;;  %v157_v26 = vstv %s538_s1 }
  0x29   :  { %p441_p12 = scmp.lt.s32.totalorder %s734_s13, 0  ;;  %s130_s16 = sadd.s32 16, %s734_s13 }
  0x2a   :  { %s166_s17 = sand.u32 127, %s442_s15   ;;  %s560_s18 = sld [smem:[#allocation3 + $0x7]]  ;;  %v567_v12 = vadd.f32 %v73_v9, %v67_v7  ;;  %v569_v13 = vadd.f32 %v74_v10, %v68_v8 }
  0x2b   :  { %s736_s16 = smov (!%p441_p12, %s130_s16), %s734_s13  ;;  %s167_s19 = ssub.s32 0, %s166_s17 }
  0x2c   :  { %s565_s0 = sld [smem:[#allocation4 + $0xb]]  ;;  %s132_s20 = sand.u32 15, %s736_s16  }
  0x2d   :  { %s571_s21 = sld [smem:[#allocation4 + $0xf]]  ;;  %s133_s22 = sand.u32 7, %s132_s20  }
  0x2e   :  { %s134_s24 = sshrl.u32 %s132_s20, 3  ;;  %s135_s25 = ssub.s32 8, %s133_s22  ;;  %v140_v14 = vstv %s133_s22 }
  0x2f   :  { %s144_s26 = sand.u32 1, %s134_s24  ;;  %v136_v15 = vstv %s135_s25  ;;  %vm141_vm0 = vcmp.lt.s32.totalorder %v563_v11, %v140_v14  ;;  %s738_s19 = smov (!%p163_p11, %s167_s19), %s166_s17 }
  0x30   :  { %v145_v16 = vstv %s144_s26  ;;  %v137_v17 = vrot.slane %v567_v12, %v136_v15  ;;  %v139_v18 = vrot.slane %v569_v13, %v136_v15  ;;  %s578_s27 = sld [smem:[#allocation4 + $0x10]]  ;;  %s581_s28 = ssub.s32 16, %s545_s6 }
  0x31   :  { %vm146_vm1 = vcmp.ne.s32.totalorder %v145_v16, 0  ;;  %p444_p13 = scmp.lt.s32.totalorder %s738_s19, 0  ;;  %s173_s30 = sadd.s32 128, %s738_s19 }
  0x32   :  { %v142_v19 = vsel %vm141_vm0, %v137_v17, %v139_v18  ;;  %v143_v20 = vsel %vm141_vm0, %v139_v18, %v137_v17  ;;  %p312_p0 = scmp.lt.s32.totalorder %s581_s28, 0  ;;  %s313_s29 = ssub.s32 0, %s581_s28  ;;  %v345_v54 = vstv %s565_s0 }
  0x33   :  { %v147_v22 = vsel %vm146_vm1, %v142_v19, %v143_v20  ;;  %v148_v23 = vsel %vm146_vm1, %v143_v20, %v142_v19  ;;  %s740_s30 = smov (!%p444_p13, %s173_s30), %s738_s19  ;;  %s590_s4 = sld [smem:[#allocation4 + $0xc]]  ;;  %v264_v29 = vstv %s571_s21 }
  0x34   :  { %v149_v24 = vrot.slane %v147_v22, 1  ;;  %v150_v25 = vrot.slane %v148_v23, 1  ;;  %s466_s5 = smin.u32 %s313_s29, %s581_s28  ;;  %v155_v27 = vmul.f32 %v154_v21, %v147_v22  ;;  %s598_s8 = ssub.s32 128, %s560_s18  ;;  %v156_v36 = vmul.f32 %v154_v21, %v148_v23 }
  0x35   :  { %s315_s7 = sand.u32 15, %s466_s5   ;;  %s175_s1 = sand.u32 127, %s740_s30   ;;  %v265_v39 = vmul.f32 %v461_v28, %v264_v29  ;;  %v266_v43 = vmul.f32 %v462_v35, %v264_v29 }
  0x36   :  { %v152_v30 = vsel %vm151_vm2, %v149_v24, %v150_v25  ;;  %v153_v31 = vsel %vm151_vm2, %v150_v25, %v149_v24  ;;  %v258_v34 = vstv %s578_s27  ;;  %s316_s15 = ssub.s32 0, %s315_s7  ;;  %s355_s16 = ssub.s32 0, %s598_s8 }
  0x37   :  { %v158_v37 = vmul.f32 %v157_v26, %v152_v30  ;;  %v159_v38 = vmul.f32 %v157_v26, %v153_v31  ;;  %s742_s15 = smov (!%p312_p0, %s316_s15), %s315_s7  ;;  %s618_s17 = sld [smem:[#allocation3]]  ;;  %v259_v41 = vmul.f32 %v459_v32, %v258_v34  ;;  %v260_v42 = vmul.f32 %v460_v33, %v258_v34 }
  0x38   :  { %p468_p1 = scmp.lt.s32.totalorder %s742_s15, 0  ;;  %s322_s18 = sadd.s32 16, %s742_s15 }
  0x39   :  { %v160_v40 = vadd.f32 %v158_v37, %v155_v27  ;;  %p354_p2 = scmp.lt.s32.totalorder %s598_s8, 0  ;;  %s469_s2 = smin.u32 %s355_s16, %s598_s8  ;;  %v161_v44 = vadd.f32 %v159_v38, %v156_v36  ;;  %v626_v45 = vadd.f32 %v265_v39, %v259_v41  ;;  %v628_v46 = vadd.f32 %v266_v43, %v260_v42 }
  0x3a   :  { %s744_s18 = smov (!%p468_p1, %s322_s18), %s742_s15  ;;  %s357_s19 = sand.u32 127, %s469_s2   ;;  %v348_v59 = vstv %s590_s4  ;;  %v35_v36 = vand.u32 127, %v31_v6 }
  0x3b   :  { %177 = vrot.lane.b32.xlu0 %v160_v40, %s175_s1  ;;  %s624_s20 = sld [smem:[#allocation3 + $0x5]]  ;;  %s324_s21 = sand.u32 15, %s744_s18  }
  0x3c   :  { %s358_s22 = ssub.s32 0, %s357_s19  ;;  %s325_s24 = sand.u32 7, %s324_s21  }
  0x3d   :  { %s326_s25 = sshrl.u32 %s324_s21, 3  ;;  %s327_s26 = ssub.s32 8, %s325_s24  ;;  %v332_v47 = vstv %s325_s24 }
  0x3e   :  { %s336_s27 = sand.u32 1, %s326_s25  ;;  %v328_v48 = vstv %s327_s26  ;;  %vm333_vm3 = vcmp.lt.s32.totalorder %v563_v11, %v332_v47  ;;  %s746_s22 = smov (!%p354_p2, %s358_s22), %s357_s19 }
  0x3f   :  { %179 = vrot.lane.b32.xlu0 %v161_v44, %s175_s1  ;;  %v337_v49 = vstv %s336_s27  ;;  %v329_v50 = vrot.slane %v626_v45, %v328_v48  ;;  %v331_v51 = vrot.slane %v628_v46, %v328_v48  ;;  %s77_s28 = ssub.s32 16, %s618_s17  ;;  %p471_p3 = scmp.lt.s32.totalorder %s746_s22, 0 }
  0x40   :  { %vm338_vm4 = vcmp.ne.s32.totalorder %v337_v49, 0  ;;  %s364_s29 = sadd.s32 128, %s746_s22  ;;  %p78_p4 = scmp.lt.s32.totalorder %s77_s28, 0  ;;  %v33_v49 = vadd.s32 8, %v563_v11 }
  0x41   :  { %v334_v52 = vsel %vm333_vm3, %v329_v50, %v331_v51  ;;  %v335_v53 = vsel %vm333_vm3, %v331_v51, %v329_v50  ;;  %s79_s30 = ssub.s32 0, %s77_s28  ;;  %s748_s29 = smov (!%p471_p3, %s364_s29), %s746_s22  ;;  %vm210_vm3 = vcmask 7168  }
  0x42   :  { %v339_v55 = vsel %vm338_vm4, %v334_v52, %v335_v53  ;;  %v340_v56 = vsel %vm338_vm4, %v335_v53, %v334_v52  ;;  %s436_s5 = smin.u32 %s79_s30, %s77_s28  ;;  %s643_s23 = ssub.s32 16, %s624_s20 }
  0x43   :  { %v341_v57 = vrot.slane %v339_v55, 1  ;;  %v342_v58 = vrot.slane %v340_v56, 1  ;;  %v346_v60 = vmul.f32 %v345_v54, %v339_v55  ;;  %s81_s6 = sand.u32 15, %s436_s5   ;;  %v347_v63 = vmul.f32 %v345_v54, %v340_v56  ;;  %s366_s4 = sand.u32 127, %s748_s29  }
  0x44   :  { %s82_s0 = ssub.s32 0, %s81_s6  ;;  %s271_s7 = ssub.s32 0, %s643_s23 }
  0x45   :  { %v343_v61 = vsel %vm151_vm2, %v341_v57, %v342_v58  ;;  %v344_v62 = vsel %vm151_vm2, %v342_v58, %v341_v57  ;;  %s750_s0 = smov (!%p78_p4, %s82_s0), %s81_s6  ;;  %s463_s1 = smin.u32 %s271_s7, %s643_s23 }
  0x46   :  { %v349_v0 = vmul.f32 %v348_v59, %v343_v61  ;;  %v350_v1 = vmul.f32 %v348_v59, %v344_v62  ;;  %p438_p5 = scmp.lt.s32.totalorder %s750_s0, 0  ;;  %s88_s8 = sadd.s32 16, %s750_s0 }
  0x47   :  { %p270_p6 = scmp.lt.s32.totalorder %s643_s23, 0  ;;  %s273_s9 = sand.u32 15, %s463_s1  }
  0x48   :  { %v351_v2 = vadd.f32 %v349_v0, %v346_v60  ;;  %v352_v3 = vadd.f32 %v350_v1, %v347_v63  ;;  %s752_s8 = smov (!%p438_p5, %s88_s8), %s750_s0  ;;  %s274_s11 = ssub.s32 0, %s273_s9 }
  0x49   :  { %s90_s10 = sand.u32 15, %s752_s8   ;;  %s754_s11 = smov (!%p270_p6, %s274_s11), %s273_s9 }
  0x4a   :  { %368 = vrot.lane.b32.xlu1 %v351_v2, %s366_s4  ;;  %s91_s12 = sand.u32 7, %s90_s10   ;;  %s92_s13 = sshrl.u32 %s90_s10, 3 }
  0x4b   :  { %s93_s14 = ssub.s32 8, %s91_s12  ;;  %v98_v4 = vstv %s91_s12  ;;  %s102_s15 = sand.u32 1, %s92_s13 }
  0x4c   :  { %v94_v5 = vstv %s93_s14  ;;  %vm99_vm5 = vcmp.lt.s32.totalorder %v563_v11, %v98_v4  ;;  %v103_v7 = vstv %s102_s15  ;;  %p465_p7 = scmp.lt.s32.totalorder %s754_s11, 0  ;;  %s280_s16 = sadd.s32 16, %s754_s11 }
  0x4d   :  { %v95_v8 = vrot.slane %v567_v12, %v94_v5  ;;  %v97_v9 = vrot.slane %v569_v13, %v94_v5  ;;  %vm104_vm6 = vcmp.ne.s32.totalorder %v103_v7, 0  ;;  %s509_s17 = smov 127   ;;  %s47_s22 = sld [smem:[#allocation4]] }
  0x4e   :  { %370 = vrot.lane.b32.xlu1 %v352_v3, %s366_s4  ;;  %s756_s16 = smov (!%p465_p7, %s280_s16), %s754_s11  ;;  %s429_s24 = sld [smem:[#allocation4 + $0x4]] }
  0x4f   :  { %v100_v10 = vsel %vm99_vm5, %v95_v8, %v97_v9  ;;  %v101_v14 = vsel %vm99_vm5, %v97_v9, %v95_v8  ;;  %s282_s18 = sand.u32 15, %s756_s16   ;;  %s426_s25 = sld [smem:[#allocation4 + $0x1]] }
  0x50   :  { %v105_v15 = vsel %vm104_vm6, %v100_v10, %v101_v14  ;;  %v106_v16 = vsel %vm104_vm6, %v101_v14, %v100_v10  ;;  %s283_s2 = sand.u32 7, %s282_s18   ;;  %s284_s19 = sshrl.u32 %s282_s18, 3 }
  0x51   :  { %107 = vrot.lane.b32.xlu0 %v105_v15, %s509_s17  ;;  %s285_s20 = ssub.s32 8, %s283_s2  ;;  %v290_v17 = vstv %s283_s2  ;;  %s294_s21 = sand.u32 1, %s284_s19 }
  0x52   :  { %109 = vrot.lane.b32.xlu1 %v106_v16, %s509_s17  ;;  %v286_v12 = vstv %s285_s20  ;;  %vm291_vm7 = vcmp.lt.s32.totalorder %v563_v11, %v290_v17  ;;  %v295_v13 = vstv %s294_s21  ;;  %s430_s26 = sld [smem:[#allocation4 + $0x5]] }
  0x53   :  { %v287_v18 = vrot.slane %v626_v45, %v286_v12  ;;  %v289_v19 = vrot.slane %v628_v46, %v286_v12  ;;  %vm296_vm8 = vcmp.ne.s32.totalorder %v295_v13, 0  ;;  %s672_s27 = sld [smem:[#allocation3 + $0x3]]  ;;  %v111_v31 = vstv %s47_s22 }
  0x54   :  { %s425_s28 = sld [smem:[#allocation3 + $0x4]]  ;;  %v185_v33 = vstv %s429_s24  ;;  %v112_v37 = vmul.f32 %v111_v31, %v105_v15  ;;  %v113_v44 = vmul.f32 %v111_v31, %v106_v16 }
  0x55   :  { %v292_v20 = vsel %vm291_vm7, %v287_v18, %v289_v19  ;;  %v293_v21 = vsel %vm291_vm7, %v289_v19, %v287_v18  ;;  %v114_v32 = vstv %s426_s25  ;;  %s686_s29 = sld [smem:[#allocation4 + $0x9]] }
  0x56   :  { %v660_v22 = vsel %vm296_vm8, %v292_v20, %v293_v21  ;;  %v662_v23 = vsel %vm296_vm8, %v293_v21, %v292_v20  ;;  %s688_s30 = sld [smem:[#allocation4 + $0xa]] }
  0x57   :  { %299 = vrot.lane.b32.xlu0 %v660_v22, %s509_s17  ;;  %301 = vrot.lane.b32.xlu1 %v662_v23, %s509_s17  ;;  %s690_s5 = sld [smem:[#allocation4 + $0xd]] }
  0x58   :  { %v188_v35 = vstv %s430_s26  ;;  %s696_s6 = sld [smem:[#allocation4 + $0xe]] }
  0x59   :  { %v195_v39 = vstv %s672_s27  ;;  %s698_s23 = sld [smem:[#allocation3 + $0x8]] }
  0x5a   :  { %v198_v40 = vstv %s425_s28  ;;  %vm677_vm9 = vcmp.lt.s32.totalorder %v563_v11, %v195_v39  ;;  %vm197_vm12 = vcmp.lt.s32.totalorder %v33_v49, %v195_v39  ;;  %s449_s0 = sld [smem:[#allocation3 + $0x9]] }
  0x5b   :  { %vm681_vm10 = vcmp.lt.s32.totalorder %v35_v36, %v198_v40  ;;  %v303_v60 = vstv %s686_s29  ;;  %s433_s4 = sld [smem:[#allocation4 + $0x8]] }
  0x5c   :  { %vm200_vm11 = vmand %vm677_vm9, %vm681_vm10  ;;  %v306_v61 = vstv %s688_s30  ;;  %v304_v1 = vmul.f32 %v303_v60, %v660_v22  ;;  %v305_v9 = vmul.f32 %v303_v60, %v662_v23  ;;  %s458_s7 = sld [smem:[#allocation4 + $0x11]] }
  0x5d   :  { %vm201_vm13 = vmand %vm197_vm12, %vm681_vm10  ;;  %v376_v63 = vstv %s690_s5 }
  0x5e   :  { %v379_v0 = vstv %s696_s6 }
  0x5f   :  { %v386_v3 = vstv %s698_s23 }
  0x60   :  { %v389_v5 = vstv %s449_s0  ;;  %vm387_vm14 = vcmp.lt.s32.totalorder %v563_v11, %v386_v3  ;;  %vm388_vm1 = vcmp.lt.s32.totalorder %v33_v49, %v386_v3 }
  0x61   :  { %vm711_vm15 = vcmp.lt.s32.totalorder %v35_v36, %v389_v5 }
  0x62   :  { %vm391_vm0 = vmand %vm387_vm14, %vm711_vm15 }
  0x63   :  { %vm392_vm2 = vmand %vm388_vm1, %vm711_vm15 }
  0xad   :  { %v178_v24 = vpop.permute.xlu0 %177 }
  0xae   :  { %181 = vrot.lane.b32.xlu0 %v178_v24, %s509_s17  ;;  %v186_v42 = vmul.f32 %v185_v33, %v178_v24 }
  0xb1   :  { %v180_v25 = vpop.permute.xlu0 %179 }
  0xb2   :  { %183 = vrot.lane.b32.xlu1 %v180_v25, %s509_s17  ;;  %v187_v51 = vmul.f32 %v185_v33, %v180_v25 }
  0xbc   :  { %v666_v26 = vpop.permute.xlu1 %368 }
  0xbd   :  { %372 = vrot.lane.b32.xlu0 %v666_v26, %s509_s17  ;;  %v377_v7 = vmul.f32 %v376_v63, %v666_v26 }
  0xc0   :  { %v669_v27 = vpop.permute.xlu1 %370 }
  0xc1   :  { %374 = vrot.lane.b32.xlu1 %v669_v27, %s509_s17  ;;  %v378_v12 = vmul.f32 %v376_v63, %v669_v27 }
  0xc3   :  { %v108_v28 = vpop.permute.xlu0 %107 }
  0xc4   :  { %v110_v29 = vpop.permute.xlu1 %109  ;;  %v115_v38 = vmul.f32 %v114_v32, %v108_v28 }
  0xc5   :  { %v116_v48 = vmul.f32 %v114_v32, %v110_v29 }
  0xc6   :  { %v117_v47 = vadd.f32 %v115_v38, %v112_v37 }
  0xc7   :  { %v118_v54 = vadd.f32 %v116_v48, %v113_v44 }
  0xc9   :  { %v300_v30 = vpop.permute.xlu0 %299  ;;  %v302_v34 = vpop.permute.xlu1 %301 }
  0xca   :  { %v307_v2 = vmul.f32 %v306_v61, %v300_v30  ;;  %v308_v14 = vmul.f32 %v306_v61, %v302_v34 }
  0xcc   :  { %v309_v10 = vadd.f32 %v307_v2, %v304_v1  ;;  %v310_v19 = vadd.f32 %v308_v14, %v305_v9 }
 0x120   :  { %v182_v41 = vpop.permute.xlu0 %181 }
 0x121   :  { %v189_v43 = vmul.f32 %v188_v35, %v182_v41 }
 0x123   :  { %v191_v6 = vadd.f32 %v189_v43, %v186_v42 }
 0x124   :  { %v184_v50 = vpop.permute.xlu1 %183 }
 0x125   :  { %v190_v52 = vmul.f32 %v188_v35, %v184_v50  ;;  %v193_v53 = vsub.f32 %v117_v47, %v191_v6 }
 0x127   :  { %v192_v55 = vadd.f32 %v190_v52, %v187_v51  ;;  %v202_v56 = vmul.f32 %v193_v53, %v193_v53 }
 0x129   :  { %v204_v57 = vsel %vm200_vm11, %v202_v56, 0.0  ;;  %v194_v58 = vsub.f32 %v118_v54, %v192_v55 }
 0x12a   :  { %206 = vadd.xlane.f32.xlu0 %v204_v57 }
 0x12b   :  { %v203_v59 = vmul.f32 %v194_v58, %v194_v58 }
 0x12d   :  { %v205_v62 = vsel %vm201_vm13, %v203_v59, 0.0 }
 0x12e   :  { %208 = vadd.xlane.f32.xlu1 %v205_v62 }
 0x12f   :  { %v373_v4 = vpop.permute.xlu0 %372 }
 0x130   :  { %v380_v8 = vmul.f32 %v379_v0, %v373_v4 }
 0x132   :  { %v382_v15 = vadd.f32 %v380_v8, %v377_v7 }
 0x133   :  { %v375_v17 = vpop.permute.xlu1 %374 }
 0x134   :  { %v381_v13 = vmul.f32 %v379_v0, %v375_v17  ;;  %v384_v18 = vsub.f32 %v309_v10, %v382_v15 }
 0x136   :  { %v383_v20 = vadd.f32 %v381_v13, %v378_v12  ;;  %v393_v21 = vmul.f32 %v384_v18, %v384_v18 }
 0x138   :  { %v395_v11 = vsel %vm391_vm0, %v393_v21, 0.0  ;;  %v385_v22 = vsub.f32 %v310_v19, %v383_v20 }
 0x139   :  { %397 = vadd.xlane.f32.xlu0 %v395_v11 }
 0x13a   :  { %v394_v23 = vmul.f32 %v385_v22, %v385_v22 }
 0x13c   :  { %v396_v24 = vsel %vm392_vm2, %v394_v23, 0.0 }
 0x13d   :  { %399 = vadd.xlane.f32.xlu0 %v396_v24 }
 0x1b3   :  { %v207_v25 = vpop.xlane.xlu0 %206 }
 0x1b4   :  { %v211_v27 = vsel %vm210_vm3, %v207_v25, 0.0 }
 0x1b7   :  { %v209_v26 = vpop.xlane.xlu1 %208 }
 0x1b8   :  { %v212_v28 = vsel %vm210_vm3, %v209_v26, 0.0 }
 0x1b9   :  { %v213_v29 = vadd.f32 %v212_v28, %v211_v27 }
 0x1bb   :  { %214 = vadd.xlane.f32.xlu1 %v213_v29 }
 0x1c2   :  { %v398_v30 = vpop.xlane.xlu0 %397 }
 0x1c3   :  { %v401_v32 = vsel %vm210_vm3, %v398_v30, 0.0 }
 0x1c6   :  { %v400_v31 = vpop.xlane.xlu0 %399 }
 0x1c7   :  { %v402_v33 = vsel %vm210_vm3, %v400_v31, 0.0 }
 0x1c8   :  { %v403_v34 = vadd.f32 %v402_v33, %v401_v32 }
 0x1ca   :  { %404 = vadd.xlane.f32.xlu0 %v403_v34 }
 0x244   :  { %v215_v35 = vpop.xlane.xlu1 %214 }
 0x245   :  { %v216_v36 = vrot.slane %v215_v35, 4 }
 0x247   :  { %v217_v37 = vadd.f32 %v216_v36, %v215_v35 }
 0x249   :  { %v218_v38 = vrot.slane %v217_v37, 2 }
 0x24b   :  { %v219_v39 = vadd.f32 %v218_v38, %v217_v37 }
 0x24d   :  { %v220_v40 = vrot.slane %v219_v39, 1 }
 0x24f   :  { %v221_v41 = vadd.f32 %v220_v40, %v219_v39 }
 0x251   :  { %472 = vpush %v221_v41 }
 0x253   :  { %v405_v42 = vpop.xlane.xlu0 %404 }
 0x254   :  { %v406_v43 = vrot.slane %v405_v42, 4 }
 0x256   :  { %v407_v44 = vadd.f32 %v406_v43, %v405_v42 }
 0x258   :  { %v408_v45 = vrot.slane %v407_v44, 2 }
 0x25a   :  { %v409_v46 = vadd.f32 %v408_v45, %v407_v44 }
 0x25c   :  { %v410_v47 = vrot.slane %v409_v46, 1 }
 0x25e   :  { %v411_v48 = vadd.f32 %v410_v47, %v409_v46 }
 0x260   :  { %474 = vpush %v411_v48 }
 0x282   :  { %s473_s8 = spop %472 }
 0x283   :  { %s223_s1 = smul.f32 %s473_s8, %s433_s4 }
 0x291   :  { %s475_s9 = spop %474 }
 0x292   :  { %s413_s10 = smul.f32 %s475_s9, %s458_s7 }
 0x294   :  { %s414_s11 = sadd.f32 %s413_s10, %s223_s1 }
 0x296   :  { %v415_v6 = vstv %s414_s11 }
 0x297   :  { %416 = vst [vmem:[%s726_s3] sm:$0x1] %v415_v6 }
 0x298   :  { %421 = vsyncpa [#allocation5], 1 }

</bundles_post_ra>
